<compile_context>
chip_gen: v7x
topology: tpu7x:2x2x1
jax: 0.10.0
libtpu: 0.0.40
codegen_flags: <defaults>
</compile_context>

<pallas_src>
import functools

import jax
import jax.numpy as jnp
from jax.experimental import pallas as pl
from jax.experimental.pallas import tpu as pltpu


def _round_up(a: int, b: int) -> int:
    return ((a + b - 1) // b) * b


# --------------------------------------------------------------------------
# Kernel 1: node-feature transform + per-node attention logit contributions.
#   x_ref       : [TM, F_in]  f32  (row tile)
#   w_ref       : [F_in, C]   f32  (resident)
#   att_src_ref : [1, C]      f32  (resident)
#   att_dst_ref : [1, C]      f32  (resident)
#   h_ref       : [TM, C]     bf16 (row tile)
#   a_src_ref   : [1, TM]     f32  (column tile of a lane-major row vector)
#   a_dst_ref   : [TM, 1]     f32  (row tile)
# --------------------------------------------------------------------------
def gat_prep_kernel(x_ref, w_ref, att_src_ref, att_dst_ref,
                    h_ref, a_src_ref, a_dst_ref):
    # [TM, F_in] @ [F_in, C] -> [TM, C]  (f32 accumulation on the MXU)
    h = jnp.dot(x_ref[...], w_ref[...], preferred_element_type=jnp.float32)

    # a_src as a lane-major row vector [1, TM] via an MXU contraction
    # (avoids the expensive [TM,1] -> [1,TM] XLU relayout).
    a_src_ref[...] = jax.lax.dot_general(
        att_src_ref[...], h, (((1,), (1,)), ((), ())),
        preferred_element_type=jnp.float32)

    # a_dst as a column vector [TM, 1].
    a_dst_ref[...] = jax.lax.dot_general(
        h, att_dst_ref[...], (((1,), (1,)), ((), ())),
        preferred_element_type=jnp.float32)

    # Store h in bf16 for the aggregation matmul (bf16-native MXU operand).
    h_ref[...] = h.astype(h_ref.dtype)


# --------------------------------------------------------------------------
# Kernel 2: row-tiled masked softmax attention + aggregation.
#   adj_ref   : [TM, N]  int8   (adj[i, j] == 1 iff edge j -> i, incl. self loops)
#   a_dst_ref : [TM, 1]  f32
#   a_src_ref : [1,  N]  f32    (resident)
#   h_ref     : [N, C]   bf16   (resident)
#   bias_ref  : [1, C]   f32    (resident)
#   o_ref     : [TM, C]  f32
# --------------------------------------------------------------------------
def gat_attn_kernel(adj_ref, a_dst_ref, a_src_ref, h_ref, bias_ref, o_ref):
    # Attention logits for this tile of target nodes: [TM, N]
    e = a_dst_ref[...] + a_src_ref[...]
    # LeakyReLU(negative_slope=0.2)
    e = jnp.where(e > 0, e, 0.2 * e)

    # Mask to existing edges.  -1e30 (not finfo.min) so e - e_max stays finite.
    mask = adj_ref[...] != 0
    e = jnp.where(mask, e, -1e30)

    # Softmax over incoming edges (axis j).  Every row has a self-loop, so
    # e_max is finite and masked entries underflow to exactly 0 after exp;
    # no second mask/select is needed.
    e_max = jnp.max(e, axis=-1, keepdims=True)
    p = jnp.exp(e - e_max)
    denom = jnp.sum(p, axis=-1, keepdims=True)
    attn = (p * pl.reciprocal(denom, approx=True)).astype(jnp.bfloat16)

    # Aggregate transformed source features: [TM, N] @ [N, C] on the MXU.
    out = jnp.dot(attn, h_ref[...], preferred_element_type=jnp.float32)
    o_ref[...] = out + bias_ref[...]


# --------------------------------------------------------------------------
# Wrapper
# --------------------------------------------------------------------------
@functools.partial(jax.jit, static_argnames=("tm",))
def graph_encoder_forward(x, edge_index, W, att_src, att_dst, bias, *, tm=256):
    """x: [N, F_in] f32; edge_index: [2, E] int32 (row 0 = src, row 1 = dst)."""
    N, F_in = x.shape
    C = W.shape[1]

    # Lane-dense output channels.
    C_pad = _round_up(C, 128)
    # Row tile: at most `tm`, at least the (sublane-rounded) node count.
    TM = min(tm, _round_up(N, 8))
    N_pad = _round_up(N, TM)

    f32 = jnp.float32

    # Zero-pad parameters / features (padded channels & nodes stay exactly 0).
    x_p = jnp.zeros((N_pad, F_in), f32).at[:N, :].set(x)
    W_p = jnp.zeros((F_in, C_pad), f32).at[:, :C].set(W)
    att_src_p = jnp.zeros((1, C_pad), f32).at[:, :C].set(att_src.reshape(1, C))
    att_dst_p = jnp.zeros((1, C_pad), f32).at[:, :C].set(att_dst.reshape(1, C))
    bias_p = jnp.zeros((1, C_pad), f32).at[:, :C].set(bias.reshape(1, C))

    # Densify edge_index into an int8 adjacency mask adj[dst, src] with
    # self-loops on EVERY row (including padded rows, so no softmax row is
    # empty).  Plain-JAX glue; duplicate edges collapse to 1.
    adj = jnp.zeros((N_pad, N_pad), jnp.int8)
    adj = adj.at[edge_index[1], edge_index[0]].set(1)
    idx = jnp.arange(N_pad)
    adj = adj.at[idx, idx].set(1)

    grid = (N_pad // TM,)

    # ---- kernel 1: h, a_src (row), a_dst (col), row-tiled + pipelined ---------
    h, a_src_row, a_dst_col = pl.pallas_call(
        gat_prep_kernel,
        out_shape=(
            jax.ShapeDtypeStruct((N_pad, C_pad), jnp.bfloat16),
            jax.ShapeDtypeStruct((1, N_pad), f32),
            jax.ShapeDtypeStruct((N_pad, 1), f32),
        ),
        grid_spec=pltpu.PrefetchScalarGridSpec(
            num_scalar_prefetch=0,
            grid=grid,
            in_specs=[
                pl.BlockSpec((TM, F_in), lambda i: (i, 0)),      # x row tile
                pl.BlockSpec((F_in, C_pad), lambda i: (0, 0)),   # W (resident)
                pl.BlockSpec((1, C_pad), lambda i: (0, 0)),      # att_src (resident)
                pl.BlockSpec((1, C_pad), lambda i: (0, 0)),      # att_dst (resident)
            ],
            out_specs=(
                pl.BlockSpec((TM, C_pad), lambda i: (i, 0)),     # h row tile
                pl.BlockSpec((1, TM), lambda i: (0, i)),         # a_src column tile
                pl.BlockSpec((TM, 1), lambda i: (i, 0)),         # a_dst row tile
            ),
        ),
        compiler_params=pltpu.CompilerParams(
            dimension_semantics=("parallel",),   # megacore sharding
            vmem_limit_bytes=48 * 1024 * 1024),
    )(x_p, W_p, att_src_p, att_dst_p)

    # ---- kernel 2: tiled attention over target-node rows ---------------------
    out = pl.pallas_call(
        gat_attn_kernel,
        out_shape=jax.ShapeDtypeStruct((N_pad, C_pad), f32),
        grid_spec=pltpu.PrefetchScalarGridSpec(
            num_scalar_prefetch=0,
            grid=grid,
            in_specs=[
                pl.BlockSpec((TM, N_pad), lambda i: (i, 0)),     # adj row tile
                pl.BlockSpec((TM, 1), lambda i: (i, 0)),         # a_dst tile
                pl.BlockSpec((1, N_pad), lambda i: (0, 0)),      # a_src (resident)
                pl.BlockSpec((N_pad, C_pad), lambda i: (0, 0)),  # h (resident)
                pl.BlockSpec((1, C_pad), lambda i: (0, 0)),      # bias (resident)
            ],
            out_specs=pl.BlockSpec((TM, C_pad), lambda i: (i, 0)),
        ),
        compiler_params=pltpu.CompilerParams(
            dimension_semantics=("parallel",),   # megacore sharding on v7x
            vmem_limit_bytes=48 * 1024 * 1024),  # fits v7x's 64 MiB VMEM
    )(adj, a_dst_col, a_src_row, h, bias_p)

    # Strip node / channel padding.
    return out[:N, :C]


if __name__ == "__main__":
    # Small, deterministic synthetic problem.
    N = 16            # number of graph nodes
    F_IN = 8          # in_channels
    C = 32            # out_channels
    E = 24            # number of (directed) edges

    key = jax.random.PRNGKey(0)
    kx, ke1, ke2, kw, ks, kd, kb = jax.random.split(key, 7)

    x = jax.random.normal(kx, (N, F_IN), dtype=jnp.float32)
    src = jax.random.randint(ke1, (E,), 0, N, dtype=jnp.int32)
    dst = jax.random.randint(ke2, (E,), 0, N, dtype=jnp.int32)
    edge_index = jnp.stack([src, dst], axis=0)  # [2, E]

    # Deterministic parameter init (glorot-ish), matching GATConv param shapes:
    #   lin weight [F_in, C], att_src [1, C], att_dst [1, C], bias [C]
    W = jax.random.normal(kw, (F_IN, C), dtype=jnp.float32) * (1.0 / jnp.sqrt(F_IN))
    att_src = jax.random.normal(ks, (1, C), dtype=jnp.float32) * (1.0 / jnp.sqrt(C))
    att_dst = jax.random.normal(kd, (1, C), dtype=jnp.float32) * (1.0 / jnp.sqrt(C))
    bias = jax.random.normal(kb, (1, C), dtype=jnp.float32) * 0.01

    out = graph_encoder_forward(x, edge_index, W, att_src, att_dst, bias)
    out = jax.block_until_ready(out)
    assert out.shape == (N, C)
    assert bool(jnp.all(jnp.isfinite(out)))
    print("KERNEL_OK")
</pallas_src>

<mosaic_0001>
module attributes {stable_mosaic.version = 11 : i64} {
  func.func @gat_prep_kernel(%arg0: i32, %arg1: memref<16x8xf32, #tpu.memory_space<vmem>>, %arg2: memref<8x128xf32, #tpu.memory_space<vmem>>, %arg3: memref<1x128xf32, #tpu.memory_space<vmem>>, %arg4: memref<1x128xf32, #tpu.memory_space<vmem>>, %arg5: memref<16x128xbf16, #tpu.memory_space<vmem>>, %arg6: memref<1x16xf32, #tpu.memory_space<vmem>>, %arg7: memref<16x1xf32, #tpu.memory_space<vmem>>) attributes {dimension_semantics = [#tpu.dimension_semantics<parallel>], iteration_bounds = array<i64: 1>, scalar_prefetch = 0 : i64, scratch_operands = 0 : i64, tpu.core_type = #tpu.core_type<tc>, window_params = [{transform_indices = @transform_0, window_bounds = array<i64: 16, 8>}, {pipeline_mode = #tpu.pipeline_mode<synchronous>, transform_indices = @transform_1, window_bounds = array<i64: 8, 128>}, {pipeline_mode = #tpu.pipeline_mode<synchronous>, transform_indices = @transform_2, window_bounds = array<i64: 1, 128>}, {pipeline_mode = #tpu.pipeline_mode<synchronous>, transform_indices = @transform_3, window_bounds = array<i64: 1, 128>}, {transform_indices = @transform_4, window_bounds = array<i64: 16, 128>}, {transform_indices = @transform_5, window_bounds = array<i64: 1, 16>}, {transform_indices = @transform_6, window_bounds = array<i64: 16, 1>}]} {
    %c0 = arith.constant 0 : index
    %c0_0 = arith.constant 0 : index
    %0 = vector.load %arg1[%c0, %c0_0] : memref<16x8xf32, #tpu.memory_space<vmem>>, vector<16x8xf32>
    %c0_1 = arith.constant 0 : index
    %c0_2 = arith.constant 0 : index
    %1 = vector.load %arg2[%c0_1, %c0_2] : memref<8x128xf32, #tpu.memory_space<vmem>>, vector<8x128xf32>
    %cst = arith.constant dense<0.000000e+00> : vector<16x128xf32>
    %2 = tpu.matmul %0, %1, %cst {dimension_numbers = #tpu.dot_dimension_numbers<[1], [0], [0], [1], [0, 0, 1, 1], [], []>} : vector<16x8xf32>, vector<8x128xf32>, vector<16x128xf32> -> vector<16x128xf32>
    %c0_3 = arith.constant 0 : index
    %c0_4 = arith.constant 0 : index
    %3 = vector.load %arg3[%c0_3, %c0_4] : memref<1x128xf32, #tpu.memory_space<vmem>>, vector<1x128xf32>
    %cst_5 = arith.constant dense<0.000000e+00> : vector<1x16xf32>
    %4 = tpu.matmul %3, %2, %cst_5 {dimension_numbers = #tpu.dot_dimension_numbers<[1], [1], [0], [0], [0, 0, 1, 0], [], []>} : vector<1x128xf32>, vector<16x128xf32>, vector<1x16xf32> -> vector<1x16xf32>
    %c0_6 = arith.constant 0 : index
    %c0_7 = arith.constant 0 : index
    %5 = vector.load %arg6[%c0_6, %c0_7] : memref<1x16xf32, #tpu.memory_space<vmem>>, vector<1x16xf32>
    tpu.vector_store %arg6[%c0_6, %c0_7], %4 {strides = array<i32>} : memref<1x16xf32, #tpu.memory_space<vmem>>, vector<1x16xf32>,
    %c0_8 = arith.constant 0 : index
    %c0_9 = arith.constant 0 : index
    %6 = vector.load %arg4[%c0_8, %c0_9] : memref<1x128xf32, #tpu.memory_space<vmem>>, vector<1x128xf32>
    %cst_10 = arith.constant dense<0.000000e+00> : vector<16x1xf32>
    %7 = tpu.matmul %2, %6, %cst_10 {dimension_numbers = #tpu.dot_dimension_numbers<[1], [1], [0], [0], [0, 0, 1, 0], [], []>} : vector<16x128xf32>, vector<1x128xf32>, vector<16x1xf32> -> vector<16x1xf32>
    %c0_11 = arith.constant 0 : index
    %c0_12 = arith.constant 0 : index
    %8 = vector.load %arg7[%c0_11, %c0_12] : memref<16x1xf32, #tpu.memory_space<vmem>>, vector<16x1xf32>
    tpu.vector_store %arg7[%c0_11, %c0_12], %7 {strides = array<i32>} : memref<16x1xf32, #tpu.memory_space<vmem>>, vector<16x1xf32>,
    %9 = arith.truncf %2 : vector<16x128xf32> to vector<16x128xbf16>
    %c0_13 = arith.constant 0 : index
    %c0_14 = arith.constant 0 : index
    %10 = vector.load %arg5[%c0_13, %c0_14] : memref<16x128xbf16, #tpu.memory_space<vmem>>, vector<16x128xbf16>
    tpu.vector_store %arg5[%c0_13, %c0_14], %9 {strides = array<i32>} : memref<16x128xbf16, #tpu.memory_space<vmem>>, vector<16x128xbf16>,
    return
  }
  func.func @transform_0(%arg0: i32) -> (i32, i32) {
    %c0_i32 = arith.constant 0 : i32
    %c0_i32_0 = arith.constant 0 : i32
    return %arg0, %c0_i32 : i32, i32
  }
  func.func @transform_1(%arg0: i32) -> (i32, i32) {
    %c0_i32 = arith.constant 0 : i32
    %c0_i32_0 = arith.constant 0 : i32
    %c0_i32_1 = arith.constant 0 : i32
    return %c0_i32, %c0_i32_0 : i32, i32
  }
  func.func @transform_2(%arg0: i32) -> (i32, i32) {
    %c0_i32 = arith.constant 0 : i32
    %c0_i32_0 = arith.constant 0 : i32
    %c0_i32_1 = arith.constant 0 : i32
    return %c0_i32, %c0_i32_0 : i32, i32
  }
  func.func @transform_3(%arg0: i32) -> (i32, i32) {
    %c0_i32 = arith.constant 0 : i32
    %c0_i32_0 = arith.constant 0 : i32
    %c0_i32_1 = arith.constant 0 : i32
    return %c0_i32, %c0_i32_0 : i32, i32
  }
  func.func @transform_4(%arg0: i32) -> (i32, i32) {
    %c0_i32 = arith.constant 0 : i32
    %c0_i32_0 = arith.constant 0 : i32
    return %arg0, %c0_i32 : i32, i32
  }
  func.func @transform_5(%arg0: i32) -> (i32, i32) {
    %c0_i32 = arith.constant 0 : i32
    %c0_i32_0 = arith.constant 0 : i32
    return %c0_i32, %arg0 : i32, i32
  }
  func.func @transform_6(%arg0: i32) -> (i32, i32) {
    %c0_i32 = arith.constant 0 : i32
    %c0_i32_0 = arith.constant 0 : i32
    return %arg0, %c0_i32 : i32, i32
  }
}

module attributes {stable_mosaic.version = 11 : i64} {
  func.func @gat_attn_kernel(%arg0: i32, %arg1: memref<16x16xi8, #tpu.memory_space<vmem>>, %arg2: memref<16x1xf32, #tpu.memory_space<vmem>>, %arg3: memref<1x16xf32, #tpu.memory_space<vmem>>, %arg4: memref<16x128xbf16, #tpu.memory_space<vmem>>, %arg5: memref<1x128xf32, #tpu.memory_space<vmem>>, %arg6: memref<16x128xf32, #tpu.memory_space<vmem>>) attributes {dimension_semantics = [#tpu.dimension_semantics<parallel>], iteration_bounds = array<i64: 1>, scalar_prefetch = 0 : i64, scratch_operands = 0 : i64, tpu.core_type = #tpu.core_type<tc>, window_params = [{transform_indices = @transform_0, window_bounds = array<i64: 16, 16>}, {transform_indices = @transform_1, window_bounds = array<i64: 16, 1>}, {pipeline_mode = #tpu.pipeline_mode<synchronous>, transform_indices = @transform_2, window_bounds = array<i64: 1, 16>}, {pipeline_mode = #tpu.pipeline_mode<synchronous>, transform_indices = @transform_3, window_bounds = array<i64: 16, 128>}, {pipeline_mode = #tpu.pipeline_mode<synchronous>, transform_indices = @transform_4, window_bounds = array<i64: 1, 128>}, {transform_indices = @transform_5, window_bounds = array<i64: 16, 128>}]} {
    %c0 = arith.constant 0 : index
    %c0_0 = arith.constant 0 : index
    %0 = vector.load %arg2[%c0, %c0_0] : memref<16x1xf32, #tpu.memory_space<vmem>>, vector<16x1xf32>
    %c0_1 = arith.constant 0 : index
    %c0_2 = arith.constant 0 : index
    %1 = vector.load %arg3[%c0_1, %c0_2] : memref<1x16xf32, #tpu.memory_space<vmem>>, vector<1x16xf32>
    %2 = vector.broadcast %0 : vector<16x1xf32> to vector<16x16xf32>
    %3 = vector.broadcast %1 : vector<1x16xf32> to vector<16x16xf32>
    %4 = arith.addf %2, %3 : vector<16x16xf32>
    %cst = arith.constant 0.000000e+00 : f32
    %5 = vector.broadcast %cst : f32 to vector<16x16xf32>
    %6 = arith.cmpf ogt, %4, %5 : vector<16x16xf32>
    %cst_3 = arith.constant 2.000000e-01 : f32
    %7 = vector.broadcast %cst_3 : f32 to vector<16x16xf32>
    %8 = arith.mulf %7, %4 : vector<16x16xf32>
    %9 = arith.select %6, %4, %8 : vector<16x16xi1>, vector<16x16xf32>
    %c0_4 = arith.constant 0 : index
    %c0_5 = arith.constant 0 : index
    %10 = vector.load %arg1[%c0_4, %c0_5] : memref<16x16xi8, #tpu.memory_space<vmem>>, vector<16x16xi8>
    %c0_i8 = arith.constant 0 : i8
    %11 = vector.broadcast %c0_i8 : i8 to vector<16x16xi8>
    %12 = arith.cmpi ne, %10, %11 : vector<16x16xi8>
    %cst_6 = arith.constant -1.000000e+30 : f32
    %13 = vector.broadcast %cst_6 : f32 to vector<16x16xf32>
    %14 = arith.select %12, %9, %13 : vector<16x16xi1>, vector<16x16xf32>
    %cst_7 = arith.constant dense<0xFF800000> : vector<16xf32>
    %15 = vector.multi_reduction <maximumf>, %14, %cst_7 [1] : vector<16x16xf32> to vector<16xf32>
    %16 = vector.shape_cast %15 : vector<16xf32> to vector<16x1xf32>
    %17 = vector.broadcast %16 : vector<16x1xf32> to vector<16x16xf32>
    %18 = arith.subf %14, %17 : vector<16x16xf32>
    %19 = math.exp %18 : vector<16x16xf32>
    %cst_8 = arith.constant dense<0.000000e+00> : vector<16xf32>
    %20 = vector.multi_reduction <add>, %19, %cst_8 [1] : vector<16x16xf32> to vector<16xf32>
    %21 = vector.shape_cast %20 : vector<16xf32> to vector<16x1xf32>
    %22 = tpu.reciprocal %21 {approx = true} : vector<16x1xf32> -> vector<16x1xf32>
    %23 = vector.broadcast %22 : vector<16x1xf32> to vector<16x16xf32>
    %24 = arith.mulf %19, %23 : vector<16x16xf32>
    %25 = arith.truncf %24 : vector<16x16xf32> to vector<16x16xbf16>
    %c0_9 = arith.constant 0 : index
    %c0_10 = arith.constant 0 : index
    %26 = vector.load %arg4[%c0_9, %c0_10] : memref<16x128xbf16, #tpu.memory_space<vmem>>, vector<16x128xbf16>
    %cst_11 = arith.constant dense<0.000000e+00> : vector<16x128xf32>
    %27 = tpu.matmul %25, %26, %cst_11 {dimension_numbers = #tpu.dot_dimension_numbers<[1], [0], [0], [1], [0, 0, 1, 1], [], []>} : vector<16x16xbf16>, vector<16x128xbf16>, vector<16x128xf32> -> vector<16x128xf32>
    %c0_12 = arith.constant 0 : index
    %c0_13 = arith.constant 0 : index
    %28 = vector.load %arg5[%c0_12, %c0_13] : memref<1x128xf32, #tpu.memory_space<vmem>>, vector<1x128xf32>
    %29 = vector.broadcast %28 : vector<1x128xf32> to vector<16x128xf32>
    %30 = arith.addf %27, %29 : vector<16x128xf32>
    %c0_14 = arith.constant 0 : index
    %c0_15 = arith.constant 0 : index
    %31 = vector.load %arg6[%c0_14, %c0_15] : memref<16x128xf32, #tpu.memory_space<vmem>>, vector<16x128xf32>
    tpu.vector_store %arg6[%c0_14, %c0_15], %30 {strides = array<i32>} : memref<16x128xf32, #tpu.memory_space<vmem>>, vector<16x128xf32>,
    return
  }
  func.func @transform_0(%arg0: i32) -> (i32, i32) {
    %c0_i32 = arith.constant 0 : i32
    %c0_i32_0 = arith.constant 0 : i32
    return %arg0, %c0_i32 : i32, i32
  }
  func.func @transform_1(%arg0: i32) -> (i32, i32) {
    %c0_i32 = arith.constant 0 : i32
    %c0_i32_0 = arith.constant 0 : i32
    return %arg0, %c0_i32 : i32, i32
  }
  func.func @transform_2(%arg0: i32) -> (i32, i32) {
    %c0_i32 = arith.constant 0 : i32
    %c0_i32_0 = arith.constant 0 : i32
    %c0_i32_1 = arith.constant 0 : i32
    return %c0_i32, %c0_i32_0 : i32, i32
  }
  func.func @transform_3(%arg0: i32) -> (i32, i32) {
    %c0_i32 = arith.constant 0 : i32
    %c0_i32_0 = arith.constant 0 : i32
    %c0_i32_1 = arith.constant 0 : i32
    return %c0_i32, %c0_i32_0 : i32, i32
  }
  func.func @transform_4(%arg0: i32) -> (i32, i32) {
    %c0_i32 = arith.constant 0 : i32
    %c0_i32_0 = arith.constant 0 : i32
    %c0_i32_1 = arith.constant 0 : i32
    return %c0_i32, %c0_i32_0 : i32, i32
  }
  func.func @transform_5(%arg0: i32) -> (i32, i32) {
    %c0_i32 = arith.constant 0 : i32
    %c0_i32_0 = arith.constant 0 : i32
    return %arg0, %c0_i32 : i32, i32
  }
}

</mosaic_0001>

<bundles_post_ra>
// kernel: graph_encoder_forward.3
= control target key start
LH: loop header
LB: loop body
LE: loop exit
PB: predicated region body
PF: predicated region fallthrough
CT: control target
= control target key end

     0   :  { %v216_v1 = vmov 0   ;;  %s290_s0 = inlined_call_operand.vmem [shape: s8[16,16], index: 0, kind: input, shape index: {}]   ;;  %s291_s1 = inlined_call_operand.vmem [shape: f32[16,1], index: 1, kind: input, shape index: {}]   ;;  %s292_s2 = inlined_call_operand.vmem [shape: f32[1,16], index: 2, kind: input, shape index: {}]   ;;  %s293_s3 = inlined_call_operand.vmem [shape: bf16[16,128], index: 3, kind: input, shape index: {}]   ;;  %s294_s4 = inlined_call_operand.vmem [shape: f32[1,128], index: 4, kind: input, shape index: {}]   ;;  %s295_s5 = inlined_call_operand.hbm [shape: f32[16,128], index: 5, kind: output, shape index: {}]  }
   0x1   :  { %v24_v0 = vld [vmem:[%s291_s1] sm:$0xff]  ;;  %182 = vset.pattern.permute.xlu0 %v216_v1 }
   0x2   :  { %29 = vperm.xlu0 %182, %v24_v0  }
   0x3   :  { %10 = vsyncpa [#allocation3], 0  ;;  %v25_v2 = vld [vmem:[%s291_s1 + $0x8] sm:$0xff]  ;;  %v51_v3 = vld [vmem:[%s290_s0] sm:$0x3]  ;;  %vm63_vm4 = vcmask 130048  }
   0x4   :  { %vm53_vm0 = vnez %v51_v3  ;;  %v52_v4 = vld [vmem:[%s290_s0 + $0x2] sm:$0x3]  ;;  %v164_v6 = vld [vmem:[%s292_s2] ss:$0 sm:$0xff]  ;;  %v217_v33 = vmov 0.0   ;;  %vm218_vm7 = vmmov 0  }
   0x5   :  { %v55_v5 = vsel %vm53_vm0, 16843009, %v216_v1  ;;  %vm54_vm1 = vnez %v52_v4  ;;  %v183_v32 = vld [vmem:[%s293_s3] sm:$0xff]   ;;  %170 = vmatprep.subr.bf16.mxu0 %v217_v33  ;;  %172 = vmatprep.mubr.msk.bf16.mxu0 %vm218_vm7, %v217_v33  ;;  %s219_s3 = smov [#allocation2]  }
   0x6   :  { %34 = vperm.xlu0 %182, %v25_v2   ;;  %v57_v7 = vunpack.c.0.s8 %v55_v5  ;;  %v56_v9 = vsel %vm54_vm1, 16843009, %v216_v1  ;;  %171 = vmatpush3.bf16.msra.mxu0 %v183_v32  ;;  %v165_v41 = vld [vmem:[%s294_s4] ss:$0 sm:$0xff]  ;;  %s153_s29 = sshll.u32 %s219_s3, 4  ;;  %s154_s29 = int_to_ptr.vmem [resolvable:$true] %s153_s29 }
   0x7   :  { %v58_v12 = vunpack.c.0.s8 %v56_v9  ;;  %s192_s30 = scalar_lea.vmem %s154_s29, 256  ;;  %p197_p1 = scmp.lt.s32.totalorder %s154_s29, %s154_s29 }
   0x8   :  { %vm59_vm3 = vcmp.ne.s32.totalorder %v57_v7, 0  ;;  %p193_p0 = scmp.ne.s32.totalorder %s154_s29, %s192_s30  ;;  %p198_p2 = scmp.lt.s32.totalorder %s192_s30, %s192_s30 }
   0x9   :  { %vm60_vm6 = vcmp.ne.s32.totalorder %v58_v12, 0 }
   0xa   :  { %p199_p3 = por %p198_p2, %p197_p1 }
   0xc   :  { %p200_p4 = pnand %p199_p3, %p193_p0 }
  0x81   :  { %v30_v8 = vpop.permute.xlu0 %29 }
  0x82   :  { %v43_v10 = vadd.f32 %v164_v6, %v30_v8 }
  0x84   :  { %v47_v11 = vmul.f32 0.2, %v43_v10  ;;  %vm45_vm2 = vcmp.gt.f32.partialorder %v43_v10, 0.0 }
  0x85   :  { %v35_v13 = vpop.permute.xlu0 %34 }
  0x86   :  { %v44_v14 = vadd.f32 %v164_v6, %v35_v13  ;;  %v49_v15 = vsel %vm45_vm2, %v43_v10, %v47_v11 }
  0x87   :  { %v61_v16 = vsel %vm59_vm3, %v49_v15, -1e+30 }
  0x88   :  { %v48_v17 = vmul.f32 0.2, %v44_v14  ;;  %v64_v18 = vsel %vm63_vm4, %v61_v16, -inf  ;;  %vm46_vm5 = vcmp.gt.f32.partialorder %v44_v14, 0.0 }
  0x89   :  { %65 = vmax.xlane.f32.xlu1 %v64_v18 }
  0x8a   :  { %v50_v19 = vsel %vm46_vm5, %v44_v14, %v48_v17 }
  0x8b   :  { %v62_v20 = vsel %vm60_vm6, %v50_v19, -1e+30 }
  0x8c   :  { %v67_v21 = vsel %vm63_vm4, %v62_v20, -inf }
  0x8d   :  { %68 = vmax.xlane.f32.xlu1 %v67_v21 }
 0x116   :  { %v66_v22 = vpop.xlane.xlu1 %65 }
 0x117   :  { %v70_v23 = vsub.f32 %v61_v16, %v66_v22 }
 0x119   :  { %v72_v24 = vmul.f32 1.442695, %v70_v23 }
 0x11a   :  { %v69_v25 = vpop.xlane.xlu1 %68 }
 0x11b   :  { %184 = vpow2.f32 %v72_v24  ;;  %v71_v26 = vsub.f32 %v62_v20, %v69_v25 }
 0x11d   :  { %v74_v27 = vmul.f32 1.442695, %v71_v26 }
 0x11f   :  { %186 = vpow2.f32 %v74_v27 }
 0x125   :  { %v185_v28 = vpop.eup %184 }
 0x126   :  { %v76_v29 = vsel %vm63_vm4, %v185_v28, 0.0 }
 0x127   :  { %77 = vadd.xlane.f32.xlu0 %v76_v29 }
 0x129   :  { %v187_v30 = vpop.eup %186 }
 0x12a   :  { %v79_v31 = vsel %vm63_vm4, %v187_v30, 0.0 }
 0x12b   :  { %80 = vadd.xlane.f32.xlu1 %v79_v31 }
 0x1b4   :  { %v78_v34 = vpop.xlane.xlu0 %77 }
 0x1b5   :  { %188 = vrcp.f32 %v78_v34 }
 0x1b8   :  { %v81_v35 = vpop.xlane.xlu1 %80 }
 0x1b9   :  { %190 = vrcp.f32 %v81_v35 }
 0x1bf   :  { %v189_v36 = vpop.eup %188 }
 0x1c0   :  { %v84_v38 = vmul.f32 %v189_v36, %v185_v28 }
 0x1c3   :  { %v191_v37 = vpop.eup %190 }
 0x1c4   :  { %v85_v39 = vmul.f32 %v191_v37, %v187_v30 }
 0x1c6   :  { %v86_v40 = vpack.c.bf16 %v85_v39, %v84_v38 }
 0x1c8   :  { %173 = vmatmul.mubr.msk.bf16.vlgmr.msra.gmra.mrb[0].mxu0 %vm63_vm4, %v86_v40 }
 0x29b   :  { %v139_v42 = vpop.f32.mrb[0].mxu0 }
 0x29c   :  { %v140_v43 = vadd.f32 %v165_v41, %v139_v42  ;;  %v174_v44 = vpop.f32.mrb[1].mxu0 }
 0x29d   :  { %v142_v45 = vpop.f32.mrb[2].mxu0 }
 0x29e   :  { %146 = vst [vmem:[#allocation2] sm:$0xff] %v140_v43  ;;  %v143_v46 = vadd.f32 %v165_v41, %v142_v45  ;;  %v175_v47 = vpop.f32.mrb[3].mxu0 }
 0x2a0   :  { %147 = vst [vmem:[#allocation2 + $0x8] sm:$0xff] %v143_v46 }
 0x2a1   :  { %203 = shalt.err (!%p200_p4)
}
 0x2a2   :  { %s204_s7 = scalar_lea.hbm %s295_s5, 256 }
 0x2a3   :  { %p205_p5 = scmp.ne.s32.totalorder %s295_s5, %s204_s7  ;;  %p208_p6 = scmp.lt.u32.totalorder %s204_s7, %s295_s5 }
 0x2a5   :  { %p210_p7 = pnand %p208_p6, %p205_p5 }
 0x2a7   :  { %213 = shalt.err (!%p210_p7)
}
 0x2a8   :  { %s220_s12 = smov 128   ;;  %s221_s13 = smov 8  }
 0x2a9   :  { %159 = dma.vmem_to_hbm [thread:$0]  %s154_s29, 256, %s295_s5, [#allocation3], %s220_s12, %s220_s12, %s221_s13  }
 0x2aa   :  { %214 = dma.done.wait [#allocation3], 256  }
 0x2ab   :  { %215 = vsyncadd [#allocation3], 4294967040 }
 0x2ac   :  { %163 = vsyncpa [#allocation3], 1 }

// kernel: graph_encoder_forward.2
= control target key start
LH: loop header
LB: loop body
LE: loop exit
PB: predicated region body
PF: predicated region fallthrough
CT: control target
= control target key end

     0   :  { %vm23_vm0 = vcmask 64512   ;;  %v252_v3 = vmov 0.0|0.0   ;;  %vm253_vm1 = vmmov 0   ;;  %v254_v4 = vmov 0.0   ;;  %s317_s1 = inlined_call_operand.vmem [shape: f32[8,128], index: 1, kind: input, shape index: {}]   ;;  %s318_s0 = inlined_call_operand.vmem [shape: f32[16,8], index: 0, kind: input, shape index: {}]   ;;  %s319_s3 = inlined_call_operand.vmem [shape: f32[1,128], index: 3, kind: input, shape index: {}]   ;;  %s320_s4 = inlined_call_operand.vmem [shape: bf16[16,128], index: 4, kind: output, shape index: {0}]   ;;  %s321_s2 = inlined_call_operand.vmem [shape: f32[1,128], index: 2, kind: input, shape index: {}]   ;;  %s322_s6 = inlined_call_operand.vmem [shape: f32[16,1], index: 6, kind: output, shape index: {2}]   ;;  %s323_s5 = inlined_call_operand.vmem [shape: f32[1,16], index: 5, kind: output, shape index: {1}]  }
   0x1   :  { %v22_v0 = vld [vmem:[%s317_s1] sm:$0xff]  ;;  %v21_v2 = vld [vmem:[%s318_s0 + $0x8] sm:$0xff]  ;;  %246 = vmatprep.subr.bf16.mxu1 %v252_v3  ;;  %243 = vmatprep.mubr.msk.f32.mxu1 %vm253_vm1, %v254_v4  ;;  %vm191_vm2 = vcmask 7168   ;;  %vm176_vm3 = vcmask 122880  }
   0x2   :  { %v20_v1 = vld [vmem:[%s318_s0] sm:$0xff]  ;;  %234 = vmatprep.subr.mxu0 %v22_v0 }
   0x3   :  { %236 = vmatprep.mubr.msk.f32.mxu0 %vm23_vm0, %v20_v1  ;;  %235 = vmatpush3.msra.mxu0 %v22_v0  ;;  %v218_v5 = vld [vmem:[%s319_s3] ss:$0 sm:$0xff] }
   0x4   :  { %237 = vmatmul.mubr.msk.f32.vlgmr.msra.gmra.mrb[0].mxu0 %vm23_vm0, %v21_v2  ;;  %v105_v11 = vld [vmem:[%s321_s2] sm:$0x1] }
  0xd7   :  { %v238_v6 = vpop.f32.mrb[0].mxu0 }
  0xd8   :  { %v96_v7 = vpop.f32.mrb[1].mxu0  ;;  %v186_v10 = vmul.f32 %v238_v6, %v218_v5 }
  0xd9   :  { %v247_v8 = vpack.c.bf16 %v238_v6, %v96_v7  ;;  %v185_v9 = vmul.f32 %v218_v5, %v96_v7 }
  0xdb   :  { %227 = vst [vmem:[%s320_s4] sm:$0xff] %v247_v8   ;;  %187 = vadd.xlane.f32.xlu0 %v185_v9  ;;  %248 = vmatpush3.bf16.xpose.msra.mxu1 %v247_v8 }
  0xdf   :  { %189 = vadd.xlane.f32.xlu0 %v186_v10 }
  0xe2   :  { %244 = vmatmul.mubr.f32.vlgmr.msra.gmra.mrb[0].mxu1 %v105_v11 }
 0x168   :  { %v188_v12 = vpop.xlane.xlu0 %187 }
 0x169   :  { %192 = vst.msk [vmem:[%s322_s6] sm:$0xff] %vm191_vm2, %v188_v12 }
 0x16c   :  { %v190_v13 = vpop.xlane.xlu0 %189 }
 0x16d   :  { %193 = vst.msk [vmem:[%s322_s6 + $0x8] sm:$0xff] %vm191_vm2, %v190_v13 }
 0x1b5   :  { %v172_v14 = vpop.f32.mrb[0].mxu1 }
 0x1b6   :  { %177 = vst.msk [vmem:[%s323_s5] sm:$0x1] %vm176_vm3, %v172_v14  ;;  %v245_v15 = vpop.f32.mrb[1].mxu1 }

</bundles_post_ra>
